<compile_context>
chip_gen: v7x
topology: tpu7x:2x2x1
jax: 0.10.0
libtpu: 0.0.40
codegen_flags: <defaults>
</compile_context>

<pallas_src>
import jax
import jax.numpy as jnp
from jax.experimental import pallas as pl
from jax.experimental.pallas import tpu as pltpu


# ---------------------------------------------------------------------------
# Kernel
# ---------------------------------------------------------------------------
def _mlp_kernel(x_ref, w1_ref, b1_ref, w2_ref, b2_ref, o_ref):
    # x_ref:  (TN, D_in_p)     bf16 node-feature tile
    # w1_ref: (D_in_p, D_hid_p) bf16, resident (constant index_map, 1 buffer)
    # b1_ref: (1, D_hid_p)      f32
    # w2_ref: (D_hid_p, D_out_p) bf16, resident
    # b2_ref: (1, D_out_p)      f32
    # o_ref:  (TN, D_out_p)     bf16 output tile
    x = x_ref[...]
    h = jnp.dot(x, w1_ref[...], preferred_element_type=jnp.float32)   # MXU, f32 acc
    h = jnp.maximum(h + b1_ref[...], 0.0)                             # bias + ReLU on f32 (VPU)
    y = jnp.dot(h.astype(w2_ref.dtype), w2_ref[...],
                preferred_element_type=jnp.float32)                   # MXU, f32 acc
    y = y + b2_ref[...]
    o_ref[...] = y.astype(o_ref.dtype)                                # bf16 store


# ---------------------------------------------------------------------------
# Helpers
# ---------------------------------------------------------------------------
def _round_up(x, m):
    return ((x + m - 1) // m) * m


def _pad_cast(a, shape, dtype):
    """Cast `a` to dtype and zero-pad to `shape`.  No-op when already there."""
    if a.dtype != dtype:
        a = a.astype(dtype)
    if a.shape != tuple(shape):
        pads = [(0, t - s) for s, t in zip(a.shape, shape)]
        a = jnp.pad(a, pads)
    return a


def _choose_tile_n(n):
    """Node-tile size: aim for ~8 grid steps (pipelining + v7x megacore),
    tile a multiple of 8 sublanes, capped at 512 rows."""
    t = _round_up(pl.cdiv(n, 8), 8)
    return int(max(8, min(512, t)))


def _vmem_budget_bytes(tile_n, d_in, d_hid, d_out, out_itemsize):
    in_tiles = 2 * tile_n * d_in * 2               # double-buffered bf16 x-tile
    out_tiles = 2 * tile_n * d_out * out_itemsize  # double-buffered out tile
    weights = (d_in * d_hid + d_hid * d_out) * 2   # single-buffered bf16 (Buffered(1))
    biases = (d_hid + d_out) * 4
    interm = tile_n * (d_hid + d_out) * 4          # f32 intermediates inside kernel
    return in_tiles + out_tiles + weights + biases + interm


def prepare_gin_mlp_params(w1, b1, w2, b2):
    """One-time (init-time) pad to 128-aligned feature dims + bf16 cast.

    Hoisted out of the per-call path so the weight copy is not paid on every
    forward.  Biases stay f32 (added on the f32 accumulator).
    """
    d_in, d_hid = w1.shape
    d_out = w2.shape[1]
    d_in_p, d_hid_p, d_out_p = (_round_up(d, 128) for d in (d_in, d_hid, d_out))
    return {
        "w1": _pad_cast(w1, (d_in_p, d_hid_p), jnp.bfloat16),
        "b1": _pad_cast(jnp.reshape(b1, (1, -1)), (1, d_hid_p), jnp.float32),
        "w2": _pad_cast(w2, (d_hid_p, d_out_p), jnp.bfloat16),
        "b2": _pad_cast(jnp.reshape(b2, (1, -1)), (1, d_out_p), jnp.float32),
        "d_out": d_out,
    }


# ---------------------------------------------------------------------------
# Wrapper
# ---------------------------------------------------------------------------
def apply_node_func(h, params, *, tile_n=None, out_dtype=jnp.bfloat16):
    """Pallas-fused ApplyNodeFunc forward: relu(h @ W1 + b1) @ W2 + b2.

    Precision contract: bf16 operands, f32 MXU accumulation, bf16 output.
    """
    w1, b1, w2, b2 = params["w1"], params["b1"], params["w2"], params["b2"]
    d_out = params["d_out"]

    n = h.shape[0]
    d_in_p, d_hid_p = w1.shape
    d_out_p = w2.shape[1]

    # Zero-copy when h is already bf16 with a 128-aligned feature dim.
    h = _pad_cast(h, (n, d_in_p), jnp.bfloat16)

    if tile_n is None:
        tile_n = _choose_tile_n(n)
    n_tiles = pl.cdiv(n, tile_n)          # ragged last block handled by Pallas

    out_itemsize = jnp.dtype(out_dtype).itemsize
    cost = pl.CostEstimate(
        flops=2 * n * (d_in_p * d_hid_p + d_hid_p * d_out_p),
        transcendentals=0,
        bytes_accessed=(n * d_in_p * 2
                        + w1.size * 2 + w2.size * 2 + b1.size * 4 + b2.size * 4
                        + n * d_out_p * out_itemsize),
    )

    compiler_kwargs = dict(dimension_semantics=("parallel",))
    vmem_needed = int(1.5 * _vmem_budget_bytes(tile_n, d_in_p, d_hid_p, d_out_p,
                                               out_itemsize))
    if vmem_needed > 24 * 1024 * 1024:
        # Raise the scoped limit only when required; stay under v7x's 64 MiB.
        compiler_kwargs["vmem_limit_bytes"] = min(vmem_needed, 60 * 1024 * 1024)

    out_p = pl.pallas_call(
        _mlp_kernel,
        out_shape=jax.ShapeDtypeStruct((n, d_out_p), out_dtype),
        grid_spec=pltpu.PrefetchScalarGridSpec(
            num_scalar_prefetch=0,
            grid=(n_tiles,),
            in_specs=[
                pl.BlockSpec((tile_n, d_in_p), lambda i: (i, 0)),      # node tile
                pl.BlockSpec((d_in_p, d_hid_p), lambda i: (0, 0),      # W1 resident
                             pipeline_mode=pl.Buffered(1)),
                pl.BlockSpec((1, d_hid_p), lambda i: (0, 0),           # b1
                             pipeline_mode=pl.Buffered(1)),
                pl.BlockSpec((d_hid_p, d_out_p), lambda i: (0, 0),     # W2 resident
                             pipeline_mode=pl.Buffered(1)),
                pl.BlockSpec((1, d_out_p), lambda i: (0, 0),           # b2
                             pipeline_mode=pl.Buffered(1)),
            ],
            out_specs=pl.BlockSpec((tile_n, d_out_p), lambda i: (i, 0)),
        ),
        compiler_params=pltpu.CompilerParams(**compiler_kwargs),
        cost_estimate=cost,
    )(h, w1, b1, w2, b2)

    return out_p if d_out_p == d_out else out_p[:, :d_out]


# ---------------------------------------------------------------------------
# References
# ---------------------------------------------------------------------------
def _ref_forward_mixed(h, w1, b1, w2, b2):
    """bf16 operands, f32 accumulation -- mirrors the kernel path."""
    z = jnp.dot(h.astype(jnp.bfloat16), w1.astype(jnp.bfloat16),
                preferred_element_type=jnp.float32) + jnp.reshape(b1, (1, -1))
    z = jnp.maximum(z, 0.0)
    y = jnp.dot(z.astype(jnp.bfloat16), w2.astype(jnp.bfloat16),
                preferred_element_type=jnp.float32) + jnp.reshape(b2, (1, -1))
    return y


def _ref_forward_f32(h, w1, b1, w2, b2):
    z = jnp.maximum(h @ w1 + jnp.reshape(b1, (1, -1)), 0.0)
    return z @ w2 + jnp.reshape(b2, (1, -1))


# ---------------------------------------------------------------------------
# Demo / self-test
# ---------------------------------------------------------------------------
if __name__ == "__main__":
    key = jax.random.PRNGKey(0)
    k_h, k_w1, k_b1, k_w2, k_b2 = jax.random.split(key, 5)

    # GIN-ish shapes: feature dims 128-aligned (zero-copy activation path);
    # node count deliberately NOT a multiple of the tile size (ragged block).
    N, D_in, D_hid, D_out = 300, 128, 256, 128

    h = jax.random.normal(k_h, (N, D_in), dtype=jnp.float32).astype(jnp.bfloat16)
    w1 = jax.random.normal(k_w1, (D_in, D_hid), dtype=jnp.float32) * (1.0 / D_in) ** 0.5
    b1 = jax.random.normal(k_b1, (D_hid,), dtype=jnp.float32) * 0.01
    w2 = jax.random.normal(k_w2, (D_hid, D_out), dtype=jnp.float32) * (1.0 / D_hid) ** 0.5
    b2 = jax.random.normal(k_b2, (D_out,), dtype=jnp.float32) * 0.01

    params = prepare_gin_mlp_params(w1, b1, w2, b2)   # once, at init

    out = apply_node_func(h, params)
    out = jax.block_until_ready(out)

    assert out.shape == (N, D_out)
    assert out.dtype == jnp.bfloat16

    out_f32 = out.astype(jnp.float32)

    # Tight check vs. the mixed-precision path the kernel implements.
    ref_mixed = _ref_forward_mixed(h, w1, b1, w2, b2)
    assert jnp.allclose(out_f32, ref_mixed, atol=3e-2, rtol=3e-2), \
        "mismatch vs mixed-precision reference"

    # Looser check vs. full-f32 math (documents the bf16 precision contract).
    ref_f32 = _ref_forward_f32(h.astype(jnp.float32), w1, b1, w2, b2)
    assert jnp.allclose(out_f32, ref_f32, atol=7e-2, rtol=7e-2), \
        "mismatch vs f32 reference"

    print("KERNEL_OK")
</pallas_src>

<mosaic_0001>
module attributes {stable_mosaic.version = 11 : i64} {
  func.func @_mlp_kernel(%arg0: i32, %arg1: memref<40x128xbf16, #tpu.memory_space<vmem>>, %arg2: memref<128x256xbf16, #tpu.memory_space<vmem>>, %arg3: memref<1x256xf32, #tpu.memory_space<vmem>>, %arg4: memref<256x128xbf16, #tpu.memory_space<vmem>>, %arg5: memref<1x128xf32, #tpu.memory_space<vmem>>, %arg6: memref<40x128xbf16, #tpu.memory_space<vmem>>) attributes {dimension_semantics = [#tpu.dimension_semantics<parallel>], iteration_bounds = array<i64: 8>, scalar_prefetch = 0 : i64, scratch_operands = 0 : i64, tpu.core_type = #tpu.core_type<tc>, window_params = [{transform_indices = @transform_0, window_bounds = array<i64: 40, 128>}, {pipeline_mode = #tpu.pipeline_mode<synchronous>, transform_indices = @transform_1, window_bounds = array<i64: 128, 256>}, {pipeline_mode = #tpu.pipeline_mode<synchronous>, transform_indices = @transform_2, window_bounds = array<i64: 1, 256>}, {pipeline_mode = #tpu.pipeline_mode<synchronous>, transform_indices = @transform_3, window_bounds = array<i64: 256, 128>}, {pipeline_mode = #tpu.pipeline_mode<synchronous>, transform_indices = @transform_4, window_bounds = array<i64: 1, 128>}, {transform_indices = @transform_5, window_bounds = array<i64: 40, 128>}]} {
    %c0 = arith.constant 0 : index
    %c0_0 = arith.constant 0 : index
    %0 = vector.load %arg1[%c0, %c0_0] : memref<40x128xbf16, #tpu.memory_space<vmem>>, vector<40x128xbf16>
    %c0_1 = arith.constant 0 : index
    %c0_2 = arith.constant 0 : index
    %1 = vector.load %arg2[%c0_1, %c0_2] : memref<128x256xbf16, #tpu.memory_space<vmem>>, vector<128x256xbf16>
    %cst = arith.constant dense<0.000000e+00> : vector<40x256xf32>
    %2 = tpu.matmul %0, %1, %cst {dimension_numbers = #tpu.dot_dimension_numbers<[1], [0], [0], [1], [0, 0, 1, 1], [], []>} : vector<40x128xbf16>, vector<128x256xbf16>, vector<40x256xf32> -> vector<40x256xf32>
    %c0_3 = arith.constant 0 : index
    %c0_4 = arith.constant 0 : index
    %3 = vector.load %arg3[%c0_3, %c0_4] : memref<1x256xf32, #tpu.memory_space<vmem>>, vector<1x256xf32>
    %4 = vector.broadcast %3 : vector<1x256xf32> to vector<40x256xf32>
    %5 = arith.addf %2, %4 : vector<40x256xf32>
    %cst_5 = arith.constant 0.000000e+00 : f32
    %6 = vector.broadcast %cst_5 : f32 to vector<40x256xf32>
    %7 = arith.maximumf %5, %6 : vector<40x256xf32>
    %8 = arith.truncf %7 : vector<40x256xf32> to vector<40x256xbf16>
    %c0_6 = arith.constant 0 : index
    %c0_7 = arith.constant 0 : index
    %9 = vector.load %arg4[%c0_6, %c0_7] : memref<256x128xbf16, #tpu.memory_space<vmem>>, vector<256x128xbf16>
    %cst_8 = arith.constant dense<0.000000e+00> : vector<40x128xf32>
    %10 = tpu.matmul %8, %9, %cst_8 {dimension_numbers = #tpu.dot_dimension_numbers<[1], [0], [0], [1], [0, 0, 1, 1], [], []>} : vector<40x256xbf16>, vector<256x128xbf16>, vector<40x128xf32> -> vector<40x128xf32>
    %c0_9 = arith.constant 0 : index
    %c0_10 = arith.constant 0 : index
    %11 = vector.load %arg5[%c0_9, %c0_10] : memref<1x128xf32, #tpu.memory_space<vmem>>, vector<1x128xf32>
    %12 = vector.broadcast %11 : vector<1x128xf32> to vector<40x128xf32>
    %13 = arith.addf %10, %12 : vector<40x128xf32>
    %14 = arith.truncf %13 : vector<40x128xf32> to vector<40x128xbf16>
    %c0_11 = arith.constant 0 : index
    %c0_12 = arith.constant 0 : index
    %15 = vector.load %arg6[%c0_11, %c0_12] : memref<40x128xbf16, #tpu.memory_space<vmem>>, vector<40x128xbf16>
    tpu.vector_store %arg6[%c0_11, %c0_12], %14 {strides = array<i32>} : memref<40x128xbf16, #tpu.memory_space<vmem>>, vector<40x128xbf16>,
    return
  }
  func.func @transform_0(%arg0: i32) -> (i32, i32) {
    %c0_i32 = arith.constant 0 : i32
    %c0_i32_0 = arith.constant 0 : i32
    return %arg0, %c0_i32 : i32, i32
  }
  func.func @transform_1(%arg0: i32) -> (i32, i32) {
    %c0_i32 = arith.constant 0 : i32
    %c0_i32_0 = arith.constant 0 : i32
    %c0_i32_1 = arith.constant 0 : i32
    return %c0_i32, %c0_i32_0 : i32, i32
  }
  func.func @transform_2(%arg0: i32) -> (i32, i32) {
    %c0_i32 = arith.constant 0 : i32
    %c0_i32_0 = arith.constant 0 : i32
    %c0_i32_1 = arith.constant 0 : i32
    return %c0_i32, %c0_i32_0 : i32, i32
  }
  func.func @transform_3(%arg0: i32) -> (i32, i32) {
    %c0_i32 = arith.constant 0 : i32
    %c0_i32_0 = arith.constant 0 : i32
    %c0_i32_1 = arith.constant 0 : i32
    return %c0_i32, %c0_i32_0 : i32, i32
  }
  func.func @transform_4(%arg0: i32) -> (i32, i32) {
    %c0_i32 = arith.constant 0 : i32
    %c0_i32_0 = arith.constant 0 : i32
    %c0_i32_1 = arith.constant 0 : i32
    return %c0_i32, %c0_i32_0 : i32, i32
  }
  func.func @transform_5(%arg0: i32) -> (i32, i32) {
    %c0_i32 = arith.constant 0 : i32
    %c0_i32_0 = arith.constant 0 : i32
    return %arg0, %c0_i32 : i32, i32
  }
}

</mosaic_0001>

<bundles_post_ra>
// kernel: tpu_custom_call.1
= control target key start
LH: loop header
LB: loop body
LE: loop exit
PB: predicated region body
PF: predicated region fallthrough
CT: control target
= control target key end

     0   :  { %10 = vsyncpa [#allocation3], 0  ;;  %s1513_s0 = inlined_call_operand.hbm [shape: bf16[300,128], index: 0, kind: input, shape index: {}]   ;;  %s1514_s1 = inlined_call_operand.hbm [shape: bf16[128,256], index: 1, kind: input, shape index: {}]   ;;  %s1515_s2 = inlined_call_operand.vmem [shape: f32[1,256], index: 2, kind: input, shape index: {}]   ;;  %s1516_s3 = inlined_call_operand.hbm [shape: bf16[256,128], index: 3, kind: input, shape index: {}]   ;;  %s1517_s4 = inlined_call_operand.vmem [shape: f32[1,128], index: 4, kind: input, shape index: {}]   ;;  %s1518_s5 = inlined_call_operand.hbm [shape: bf16[300,128], index: 5, kind: output, shape index: {}]  }
   0x1   :  { %12 = vsyncpa [#allocation3 + $0x1], 0 }
   0x2   :  { %13 = vsyncpa [#allocation6], 0 }
   0x3   :  { %14 = vsyncpa [#allocation4], 0 }
   0x4   :  { %16 = vsyncpa [#allocation4 + $0x1], 0  ;;  %s1250_s18 = smov 0   ;;  %s1252_s19 = smov 0  }
   0x5   :  { %s1254_s20 = smov 0   ;;  %s1256_s21 = smov 0  }
   0x6 LB: > { %s1271_s22 = sadd.s32 4294967295, %s1205_s21   ;;  %s824_s23 = sadd.s32 4294967294, %s1205_s21   ;;  %s1205_s21 = sphi %s1256_s21, %s1540_s21   ;;  %s1201_s20 = sphi %s1254_s20, %s1539_s20   ;;  %s1197_s19 = sphi %s1252_s19, %s1538_s19   ;;  %s1193_s18 = sphi %s1250_s18, %s1537_s18  }
   0x7   : > { %s1275_s24 = sadd.s32 1, %s1205_s21   ;;  %s29_s25 = sadd.s32 1, %s1201_s20 }
   0x8   : > { %s26_s26 = ssub.s32 %s1205_s21, %s1275_s24  ;;  %p36_p0 = scmp.ne.s32.totalorder %s1201_s20, %s1197_s19 }
   0x9   : > { %p27_p1 = scmp.eq.s32.totalorder %s26_s26, 0  ;;  %p37_p2 = scmp.eq.s32.totalorder %s1205_s21, 0 }
   0xa   : > { %p42_p3 = scmp.ne.s32.totalorder %s1197_s19, %s1193_s18  ;;  %p1519_p4 = scmp.eq.s32.totalorder %s1271_s22, 0 }
   0xb   : > { %s1287_s27 = scalar_select %p27_p1, %s1201_s20, %s29_s25  }
   0xc   : > { %p1289_p5 = por %p37_p2, %p36_p0  ;;  %p1295_p6 = por %p1519_p4, %p42_p3 }
   0xd   : > { %1522 = sst [smem:[#allocation12_spill]] %s1287_s27  ;;  %p150_p7 = scmp.eq.s32.totalorder %s1271_s22, 7 }
   0xe   : > { %s1523_s28 = scalar_select %p1289_p5, 1, 0 }
   0xf   : > { %s1524_s29 = scalar_select %p1295_p6, 1, 0 }
  0x10   : > { %p156_p8 = scmp.eq.s32.totalorder %s824_s23, 7  ;;  %p825_p9 = scmp.ge.s32.totalorder %s1205_s21, 1 }
  0x11   : > { %p163_p10 = scmp.lt.s32.totalorder %s1205_s21, 9  ;;  %p1302_p11 = por %p150_p7, %p36_p0 }
  0x12   : > { %p1306_p12 = por %p156_p8, %p42_p3  ;;  %s1207_s8 = smov [#allocation5]  }
  0x13   : > { %s1525_s30 = scalar_select %p1302_p11, 1, 0 }
  0x14   : > { %s1526_s6 = scalar_select %p1306_p12, 1, 0 }
  0x15   : > { %p1310_p13 = pnand %p825_p9, %p163_p10  ;;  %s175_s9 = sshll.u32 %s1207_s8, 4  ;;  %s176_s9 = int_to_ptr.vmem [resolvable:$true] %s175_s9 }
  0x16   : > { %s1208_s11 = smov [#allocation7]   ;;  %s1051_s15 = scalar_lea.hbm %s1514_s1, 2048 }
  0x17   : > { %s1527_s7 = scalar_select %p1310_p13, 1, 0 }
  0x18   : > { %p949_p1 = pneg %p1310_p13  ;;  %s191_s12 = sshll.u32 %s1208_s11, 4  ;;  %s1322_s12 = int_to_ptr.vmem [resolvable:$true] %s191_s12 }
  0x19   : > { %p1052_p0 = scmp.ne.s32.totalorder %s1514_s1, %s1051_s15  ;;  %p1058_p9 = scmp.lt.u32.totalorder %s1051_s15, %s1514_s1 }
  0x1a   : > { %p1318_p2 = pnand %p949_p1, %p1519_p4 }
  0x1c   : > { %p1053_p3 = pneg %p1318_p2 }
  0x1e   : > { %p1054_p7 = pnand %p1053_p3, %p1052_p0 }
  0x20   : > { %p1055_p8 = pneg %p1054_p7 }
  0x22   : > { %p1060_p10 = pnand %p1058_p9, %p1055_p8 }
  0x24   : > { %1063 = shalt.err (!%p1060_p10)
}
  0x25   : > { %s1064_s26 = scalar_lea.vmem %s176_s9, 2048  ;;  %p1072_p11 = scmp.lt.s32.totalorder %s176_s9, %s176_s9 }
  0x26   : > { %p1065_p1 = scmp.ne.s32.totalorder %s176_s9, %s1064_s26  ;;  %p1073_p6 = scmp.lt.s32.totalorder %s1064_s26, %s1064_s26 }
  0x28   : > { %p1067_p4 = pnand %p1065_p1, %p1053_p3  ;;  %p1074_p13 = por %p1073_p6, %p1072_p11 }
  0x2a   : > { %p1068_p12 = pneg %p1067_p4 }
  0x2c   : > { %p1075_p5 = pnand %p1074_p13, %p1068_p12 }
  0x2e   : > { %1078 = shalt.err (!%p1075_p5)
}
  0x2f   : > { %s1209_s8 = smov 128   ;;  %s1210_s11 = smov 8  }
  0x30   : > { %952 = dma.hbm_to_vmem [thread:$0]  (!%p1318_p2), %s1514_s1, 2048, %s176_s9, [#allocation6], %s1209_s8, %s1209_s8, %s1210_s11  }
  0x31   : > { %s1079_s17 = scalar_lea.hbm %s1516_s3, 2048 }
  0x32   : > { %p1080_p4 = scmp.ne.s32.totalorder %s1516_s3, %s1079_s17  ;;  %p1086_p11 = scmp.lt.u32.totalorder %s1079_s17, %s1516_s3 }
  0x34   : > { %p1082_p5 = pnand %p1080_p4, %p1053_p3 }
  0x36   : > { %p1083_p6 = pneg %p1082_p5 }
  0x38   : > { %p1088_p12 = pnand %p1086_p11, %p1083_p6 }
  0x3a   : > { %1091 = shalt.err (!%p1088_p12)
}
  0x3b   : > { %s1092_s9 = scalar_lea.vmem %s1322_s12, 2048  ;;  %p1100_p8 = scmp.lt.s32.totalorder %s1322_s12, %s1322_s12 }
  0x3c   : > { %p1093_p13 = scmp.ne.s32.totalorder %s1322_s12, %s1092_s9  ;;  %p1101_p9 = scmp.lt.s32.totalorder %s1092_s9, %s1092_s9 }
  0x3e   : > { %p1095_p0 = pnand %p1093_p13, %p1053_p3  ;;  %p1102_p10 = por %p1101_p9, %p1100_p8 }
  0x40   : > { %p1096_p7 = pneg %p1095_p0 }
  0x42   : > { %p1103_p1 = pnand %p1102_p10, %p1096_p7 }
  0x44   : > { %1106 = shalt.err (!%p1103_p1)
}
  0x45   : > { %s1211_s27 = smov 64   ;;  %s1212_s8 = smov 4  }
  0x46   : > { %955 = dma.hbm_to_vmem [thread:$0]  (!%p1318_p2), %s1516_s3, 2048, %s1322_s12, [#allocation6], %s1211_s27, %s1211_s27, %s1212_s8  }
  0x47   : > { %p828_p4 = scmp.ge.s32.totalorder %s1205_s21, 8 }
  0x48   : > { %p1529_p3 = scmp.ne.s32.totalorder (!%p828_p4), %s1523_s28, 0 }
  0x49   : > { %204 = sbr.rel (%p828_p4) target bundleno = 115 (0x73), region = 32 }
  0x50   : > { %207 = sbr.rel (!%p1529_p3) target bundleno = 115 (0x73), region = 36  ;;  %s208_s14 = sand.u32 (%p1529_p3), 1, %s1201_s20  }
  0x51   : > { %s213_s15 = smul.u32 (%p1529_p3), 5, %s1205_s21  ;;  %s1379_s25 = scalar_lea.sflag (%p1529_p3), [#allocation3], %s208_s14 }
  0x52   : > { %s937_s16 = smul.u32 (%p1529_p3), 20, %s208_s14 }
  0x53   : > { %s214_s17 = ssub.s32 (%p1529_p3), 38, %s213_s15 }
  0x54   : > { %p215_p5 = scmp.lt.s32.totalorder (%p1529_p3), %s214_s17, 5  ;;  %s212_s12 = scalar_lea.vmem (%p1529_p3), [#allocation2], %s937_s16 }
  0x57   : > { %s1542_s17 = smov (!%p215_p5, %s214_s17), 5 }
  0x58   : > { %s1376_s23 = sshll.u32 %s1542_s17, 6 }
  0x59   : > { %s219_s10 = ssub.s32 320, %s1376_s23 }
  0x5a   : > { %220 = vsyncadd %s1379_s25, %s219_s10  ;;  %p830_p2 = scmp.ne.s32.totalorder %s1376_s23, 0  ;;  %s885_s28 = smul.u32 320, %s1205_s21 }
  0x5b   : > { %s225_s26 = sshll.u32 %s212_s12, 4  ;;  %s1111_s15 = scalar_lea.hbm %s1513_s0, 2432  ;;  %s1389_s26 = int_to_ptr.vmem [resolvable:$true] %s225_s26 }
  0x5c   : > { %s1387_s8 = scalar_lea.hbm %s1513_s0, %s885_s28 }
  0x5d   : > { %s1107_s11 = scalar_lea.hbm %s1387_s8, %s1376_s23  ;;  %p1112_p13 = scmp.lt.u32.totalorder %s1387_s8, %s1513_s0 }
  0x5e   : > { %p1108_p6 = scmp.ne.s32.totalorder %s1387_s8, %s1107_s11  ;;  %p1113_p0 = scmp.lt.u32.totalorder %s1111_s15, %s1107_s11 }
  0x5f   : > { %p1115_p8 = scmp.lt.u32.totalorder %s1107_s11, %s1387_s8 }
  0x60   : > { %p1109_p11 = pnand %p1108_p6, %p830_p2  ;;  %p1114_p7 = por %p1113_p0, %p1112_p13 }
  0x62   : > { %p1110_p12 = pneg %p1109_p11  ;;  %p1116_p9 = por %p1115_p8, %p1114_p7 }
  0x64   : > { %p1117_p10 = pnand %p1116_p9, %p1110_p12 }
  0x66   : > { %1120 = shalt.err (!%p1117_p10)
}
  0x67   : > { %s1121_s10 = scalar_lea.vmem %s1389_s26, %s1376_s23  ;;  %s1213_s12 = smov [#allocation2]  }
  0x68   : > { %p1122_p1 = scmp.ne.s32.totalorder %s1389_s26, %s1121_s10  ;;  %s1125_s28 = sshll.u32 %s1213_s12, 4  ;;  %s1126_s28 = int_to_ptr.vmem [resolvable:$false] %s1125_s28 }
  0x69   : > { %s1127_s9 = scalar_lea.vmem %s1126_s28, 640  ;;  %p1128_p5 = scmp.lt.s32.totalorder %s1389_s26, %s1126_s28 }
  0x6a   : > { %p1123_p4 = pnand %p1122_p1, %p830_p2  ;;  %p1129_p6 = scmp.lt.s32.totalorder %s1127_s9, %s1121_s10 }
  0x6c   : > { %p1124_p3 = pneg %p1123_p4  ;;  %p1130_p11 = por %p1129_p6, %p1128_p5 }
  0x6e   : > { %p1131_p13 = pnand %p1130_p11, %p1124_p3 }
  0x70   : > { %1134 = shalt.err (!%p1131_p13)
}
  0x71   : > { %s1214_s27 = smov 64   ;;  %s1215_s11 = smov 4  }
  0x72   : > { %231 = dma.hbm_to_vmem [thread:$0]  (%p830_p2), %s1387_s8, %s1376_s23, %s1389_s26, %s1379_s25, %s1214_s27, %s1214_s27, %s1215_s11  }
  0x73 PF: > { %p1530_p12 = scmp.ne.s32.totalorder %s1527_s7, 0 }
  0x74   : > { %s1419_s13 = sand.u32 (!%p1530_p12), 1, %s1197_s19   ;;  %p1531_p0 = scmp.ne.s32.totalorder (!%p1530_p12), %s1524_s29, 0 }
  0x75   : > { %237 = sbr.rel (%p1530_p12) target bundleno = 647 (0x287), region = 40  ;;  %s240_s15 = scalar_lea.sflag (!%p1530_p12), [#allocation3], %s1419_s13 }
  0x76   : > { %s938_s14 = smul.u32 (!%p1530_p12), 20, %s1419_s13 }
  0x78   : > { %s1425_s16 = scalar_lea.vmem (!%p1530_p12), [#allocation2], %s938_s14 }
  0x7c   : > { %1180 = dma.done.wait (%p1531_p0), %s240_s15, 320  }
  0x7d   : > { %1182 = vsyncadd (%p1531_p0), %s240_s15, 4294966976  ;;  %p1532_p2 = scmp.eq.s32.totalorder %s1271_s22, 0 }
  0x7f   : > { %1184 = dma.done.wait (%p1532_p2), [#allocation6], 4096   ;;  %p1533_p7 = pmov %p1532_p2 }
  0x80   : > { %v1216_v0 = vmov 0   ;;  %v1008_v1 = vld [vmem:[#allocation5 + $0x4] ss:$8 sps:$4 sm:$0xff]   ;;  %v1010_v2 = vld [vmem:[#allocation5] ss:$8 sps:$4 sm:$0xff]   ;;  %v1039_v16 = vld [vmem:[#allocation7 + $0x50] sm:$0xff]   ;;  %v312_v36 = vlaneseq }
  0x81   : > { %1186 = vsyncadd (%p1533_p7), [#allocation6], 4294963200  ;;  %450 = vmatprep.mubr.bf16.mxu0 %v1216_v0  ;;  %418 = vmatprep.subr.bf16.mxu0 %v1008_v1  ;;  %v1011_v3 = vld [vmem:[#allocation5 + $0x14] ss:$8 sps:$4 sm:$0xff]   ;;  %v1013_v4 = vld [vmem:[#allocation5 + $0x10] ss:$8 sps:$4 sm:$0xff]  }
  0x82   : > { %419 = vmatpush1.bf16.msra.mxu0 %v1010_v2  ;;  %v1014_v5 = vld [vmem:[#allocation5 + $0x24] ss:$8 sps:$4 sm:$0xff]   ;;  %v1016_v6 = vld [vmem:[#allocation5 + $0x20] ss:$8 sps:$4 sm:$0xff]   ;;  %v1017_v7 = vld [vmem:[#allocation5 + $0x34] ss:$8 sps:$4 sm:$0xff]  }
  0x83   : > { %420 = vmatprep.subr.bf16.mxu0 %v1011_v3  ;;  %v1019_v8 = vld [vmem:[#allocation5 + $0x30] ss:$8 sps:$4 sm:$0xff]   ;;  %v1020_v9 = vld [vmem:[#allocation5 + $0x44] ss:$8 sps:$4 sm:$0xff]   ;;  %v1022_v10 = vld [vmem:[#allocation5 + $0x40] ss:$8 sps:$4 sm:$0xff]  }
  0x84   : > { %v1023_v11 = vld [vmem:[#allocation5 + $0x54] ss:$8 sps:$4 sm:$0xff]   ;;  %v1035_v12 = vld [vmem:[#allocation7 + $0x40] sm:$0xff]   ;;  %v1037_v14 = vld [vmem:[#allocation7 + $0x48] sm:$0xff]   ;;  %v313_v37 = vshrl.u32 %v312_v36, 7  ;;  %s1446_s26 = scalar_lea.vmem [#allocation8], %s938_s14 }
  0x85   : > { %v1036_v13 = vld [vmem:[#allocation7] sm:$0xff]   ;;  %903 = vmatprep.subr.bf16.mxu1 %v1035_v12  ;;  %v1038_v15 = vld [vmem:[#allocation7 + $0x8] sm:$0xff]   ;;  %v1025_v17 = vld [vmem:[#allocation5 + $0x50] ss:$8 sps:$4 sm:$0xff]   ;;  %s713_s8 = scalar_lea.sflag [#allocation4], %s1419_s13  ;;  %p1534_p8 = scmp.ne.s32.totalorder %s1525_s30, 0 }
  0x86   : > { %421 = vmatpush1.bf16.msra.mxu0 %v1013_v4  ;;  %904 = vmatpush3.bf16.msra.mxu1 %v1036_v13  ;;  %v1026_v18 = vld [vmem:[#allocation5 + $0x64] ss:$8 sps:$4 sm:$0xff]   ;;  %v1028_v19 = vld [vmem:[#allocation5 + $0x60] ss:$8 sps:$4 sm:$0xff]   ;;  %v1040_v20 = vld [vmem:[#allocation7 + $0x10] sm:$0xff]   ;;  %v314_v38 = vsub.s32 0, %v313_v37 }
  0x87   : > { %422 = vmatprep.subr.bf16.mxu0 %v1014_v5  ;;  %905 = vmatprep.subr.bf16.mxu1 %v1037_v14  ;;  %v1041_v21 = vld [vmem:[#allocation7 + $0x58] sm:$0xff]   ;;  %v1043_v24 = vld [vmem:[#allocation7 + $0x60] sm:$0xff]   ;;  %v1045_v28 = vld [vmem:[#allocation7 + $0x68] sm:$0xff]   ;;  %v318_v40 = vsub.s32 1, %v313_v37  ;;  %s720_s17 = smul.u32 (%p1534_p8), 5, %s1271_s22 }
  0x88   : > { %v1029_v22 = vld [vmem:[#allocation5 + $0x74] ss:$8 sps:$4 sm:$0xff]   ;;  %v1031_v25 = vld [vmem:[#allocation5 + $0x70] ss:$8 sps:$4 sm:$0xff]   ;;  %v1044_v26 = vld [vmem:[#allocation7 + $0x20] sm:$0xff]  }
  0x89   : > { %v1042_v23 = vld [vmem:[#allocation7 + $0x18] sm:$0xff]   ;;  %v1046_v31 = vld [vmem:[#allocation7 + $0x28] sm:$0xff]   ;;  %v1047_v32 = vld [vmem:[#allocation7 + $0x70] sm:$0xff]   ;;  %s721_s10 = ssub.s32 (%p1534_p8), 38, %s720_s17 }
  0x8a   : > { %423 = vmatpush1.bf16.msra.mxu0 %v1016_v6  ;;  %906 = vmatpush3.bf16.msra.mxu1 %v1038_v15  ;;  %v1032_v27 = vld [vmem:[%s1425_s16] sm:$0xff]   ;;  %v1033_v29 = vld [vmem:[%s1425_s16 + $0x8] sm:$0xff]   ;;  %v1034_v30 = vld [vmem:[%s1425_s16 + $0x10] ss:$0 sps:$4 sm:$0xff]   ;;  %p722_p9 = scmp.lt.s32.totalorder (%p1534_p8), %s721_s10, 5 }
  0x8b   : > { %424 = vmatprep.subr.bf16.mxu0 %v1017_v7  ;;  %907 = vmatprep.subr.bf16.mxu1 %v1039_v16  ;;  %v1048_v33 = vld [vmem:[#allocation7 + $0x30] sm:$0xff]   ;;  %v1049_v34 = vld [vmem:[#allocation7 + $0x78] sm:$0xff]  }
  0x8c   : > { %v1050_v35 = vld [vmem:[#allocation7 + $0x38] sm:$0xff]  }
  0x8d   : > { %v310_v39 = vld [vmem:[%s1515_s2] sm:$0x3] }
  0x8e   : > { %425 = vmatpush1.bf16.msra.mxu0 %v1019_v8  ;;  %908 = vmatpush3.bf16.msra.mxu1 %v1040_v20  ;;  %v315_v41 = vrot.slane %v310_v39, %v314_v38  ;;  %v319_v42 = vrot.slane %v310_v39, %v318_v40 }
  0x8f   : > { %426 = vmatprep.subr.bf16.mxu0 %v1020_v9  ;;  %909 = vmatprep.subr.bf16.mxu1 %v1041_v21  ;;  %v856_v21 = vld [vmem:[%s1517_s4] ss:$0 sm:$0xff] }
  0x92   : > { %427 = vmatpush1.bf16.msra.mxu0 %v1022_v10  ;;  %910 = vmatpush3.bf16.msra.mxu1 %v1042_v23 }
  0x93   : > { %428 = vmatprep.subr.bf16.mxu0 %v1023_v11  ;;  %911 = vmatprep.subr.bf16.mxu1 %v1043_v24 }
  0x96   : > { %429 = vmatpush1.bf16.msra.mxu0 %v1025_v17  ;;  %912 = vmatpush3.bf16.msra.mxu1 %v1044_v26 }
  0x97   : > { %430 = vmatprep.subr.bf16.mxu0 %v1026_v18  ;;  %913 = vmatprep.subr.bf16.mxu1 %v1045_v28 }
  0x9a   : > { %431 = vmatpush1.bf16.msra.mxu0 %v1028_v19  ;;  %914 = vmatpush3.bf16.msra.mxu1 %v1046_v31 }
  0x9b   : > { %432 = vmatprep.subr.bf16.mxu0 %v1029_v22  ;;  %915 = vmatprep.subr.bf16.mxu1 %v1047_v32 }
  0x9e   : > { %433 = vmatpush1.bf16.msra.mxu0 %v1031_v25  ;;  %916 = vmatpush3.bf16.msra.mxu1 %v1048_v33 }
  0x9f   : > { %917 = vmatprep.subr.bf16.mxu1 %v1049_v34 }
  0xa1   : > { %451 = vmatmul.mubr.bf16.vlgmr.msra.gmra.mrb[0].mxu0 %v1032_v27 }
  0xa2   : > { %460 = vmatprep.mubr.bf16.mxu0 %v1216_v0  ;;  %918 = vmatpush3.bf16.msra.mxu1 %v1050_v35 }
  0xa9   : > { %461 = vmatmul.mubr.bf16.gmra.mrb[4].mxu0 %v1033_v29 }
  0xaa   : > { %470 = vmatprep.mubr.bf16.mxu0 %v1216_v0 }
  0xb1   : > { %471 = vmatmul.mubr.bf16.gmra.mrb[8].mxu0 %v1034_v30 }
 0x174   : > { %v452_v43 = vpop.f32.mrb[0].mxu0 }
 0x175   : > { %v453_v44 = vadd.f32 %v452_v43, %v315_v41  ;;  %v454_v45 = vpop.f32.mrb[1].mxu0 }
 0x176   : > { %v455_v46 = vadd.f32 %v454_v45, %v319_v42  ;;  %v456_v47 = vpop.f32.mrb[2].mxu0 }
 0x177   : > { %v457_v48 = vadd.f32 %v456_v47, %v315_v41  ;;  %v458_v49 = vpop.f32.mrb[3].mxu0  ;;  %v479_v51 = vmax.f32 %v453_v44, 0.0 }
 0x178   : > { %v459_v50 = vadd.f32 %v458_v49, %v319_v42  ;;  %v480_v53 = vmax.f32 %v455_v46, 0.0 }
 0x179   : > { %v481_v52 = vmax.f32 %v457_v48, 0.0 }
 0x17a   : > { %v482_v54 = vmax.f32 %v459_v50, 0.0 }
 0x17b   : > { %v489_v55 = vpack.c.bf16 %v481_v52, %v479_v51 }
 0x17c   : > { %v462_v56 = vpop.f32.mrb[4].mxu0  ;;  %v490_v57 = vpack.c.bf16 %v482_v54, %v480_v53 }
 0x17d   : > { %v463_v58 = vadd.f32 %v462_v56, %v315_v41  ;;  %v464_v59 = vpop.f32.mrb[5].mxu0 }
 0x17e   : > { %v465_v60 = vadd.f32 %v464_v59, %v319_v42  ;;  %v466_v61 = vpop.f32.mrb[6].mxu0  ;;  %662 = vmatprep.mubr.bf16.mxu1 %v490_v57 }
 0x17f   : > { %v467_v62 = vadd.f32 %v466_v61, %v315_v41  ;;  %v468_v63 = vpop.f32.mrb[7].mxu0  ;;  %663 = vmatmul.mubr.bf16.vlgmr.msra.gmra.mrb[0].mxu1 %v489_v55  ;;  %v483_v1 = vmax.f32 %v463_v58, 0.0 }
 0x180   : > { %v469_v0 = vadd.f32 %v468_v63, %v319_v42  ;;  %v484_v3 = vmax.f32 %v465_v60, 0.0 }
 0x181   : > { %v485_v2 = vmax.f32 %v467_v62, 0.0 }
 0x182   : > { %v486_v4 = vmax.f32 %v469_v0, 0.0 }
 0x183   : > { %v491_v5 = vpack.c.bf16 %v485_v2, %v483_v1 }
 0x184   : > { %v492_v6 = vpack.c.bf16 %v486_v4, %v484_v3  ;;  %v472_v7 = vpop.f32.mrb[8].mxu0 }
 0x185   : > { %v473_v8 = vadd.f32 %v472_v7, %v315_v41  ;;  %v474_v9 = vpop.f32.mrb[9].mxu0 }
 0x186   : > { %v475_v10 = vadd.f32 %v474_v9, %v319_v42  ;;  %v476_v11 = vpop.f32.mrb[10].mxu0  ;;  %670 = vmatprep.mubr.bf16.mxu1 %v492_v6 }
 0x187   : > { %v477_v12 = vpop.f32.mrb[11].mxu0  ;;  %671 = vmatmul.mubr.bf16.gmra.mrb[4].mxu1 %v491_v5  ;;  %v487_v14 = vmax.f32 %v473_v8, 0.0 }
 0x188   : > { %v488_v13 = vmax.f32 %v475_v10, 0.0 }
 0x189   : > { %v493_v16 = vpack.c.bf16 %v487_v14, %v487_v14 }
 0x18a   : > { %v494_v15 = vpack.c.bf16 %v488_v13, %v488_v13 }
 0x18c   : > { %678 = vmatprep.mubr.bf16.mxu1 %v494_v15 }
 0x18f   : > { %679 = vmatmul.mubr.bf16.gmra.mrb[8].mxu1 %v493_v16 }
 0x252   : > { %v919_v17 = vpop.f32.mrb[0].mxu1 }
 0x253   : > { %v920_v18 = vpop.f32.mrb[1].mxu1 }
 0x254   : > { %v921_v19 = vadd.f32 %v920_v18, %v919_v17  ;;  %v922_v20 = vpop.f32.mrb[2].mxu1 }
 0x255   : > { %v923_v22 = vpop.f32.mrb[3].mxu1 }
 0x256   : > { %v924_v23 = vadd.f32 %v923_v22, %v922_v20  ;;  %v665_v24 = vadd.f32 %v921_v19, %v856_v21 }
 0x258   : > { %v668_v25 = vadd.f32 %v924_v23, %v856_v21 }
 0x25a   : > { %v895_v26 = vpack.c.bf16 %v668_v25, %v665_v24  ;;  %v925_v27 = vpop.f32.mrb[4].mxu1 }
 0x25b   : > { %v926_v28 = vpop.f32.mrb[5].mxu1 }
 0x25c   : > { %896 = vst [vmem:[%s1446_s26] sm:$0xff] %v895_v26   ;;  %v927_v29 = vadd.f32 %v926_v28, %v925_v27  ;;  %v928_v30 = vpop.f32.mrb[6].mxu1 }
 0x25d   : > { %v929_v31 = vpop.f32.mrb[7].mxu1 }
 0x25e   : > { %v930_v32 = vadd.f32 %v929_v31, %v928_v30  ;;  %v673_v33 = vadd.f32 %v927_v29, %v856_v21 }
 0x260   : > { %v676_v34 = vadd.f32 %v930_v32, %v856_v21 }
 0x262   : > { %v900_v35 = vpack.c.bf16 %v676_v34, %v673_v33  ;;  %v931_v36 = vpop.f32.mrb[8].mxu1 }
 0x263   : > { %v932_v37 = vpop.f32.mrb[9].mxu1 }
 0x264   : > { %902 = vst [vmem:[%s1446_s26 + $0x8] sm:$0xff] %v900_v35   ;;  %v933_v38 = vadd.f32 %v932_v37, %v931_v36  ;;  %v934_v39 = vpop.f32.mrb[10].mxu1  ;;  %719 = sbr.rel (!%p1534_p8) target bundleno = 647 (0x287), region = 56 }
 0x265   : > { %v935_v40 = vpop.f32.mrb[11].mxu1 }
 0x266   : > { %v681_v41 = vadd.f32 %v933_v38, %v856_v21 }
 0x268   : > { %v890_v42 = vpack.c.bf16 %v681_v41, %v681_v41 }
 0x26a   : > { %711 = vst [vmem:[%s1446_s26 + $0x10] sm:$0xf] %v890_v42 }
 0x26b   : > { %s1544_s10 = smov (!%p722_p9, %s721_s10), 5 }
 0x26c   : > { %s1455_s12 = sshll.u32 %s1544_s10, 6 }
 0x26d   : > { %s726_s28 = ssub.s32 320, %s1455_s12 }
 0x26e   : > { %727 = vsyncadd %s713_s8, %s726_s28  ;;  %p879_p10 = scmp.ne.s32.totalorder %s1455_s12, 0  ;;  %s891_s30 = smul.u32 320, %s1271_s22 }
 0x26f   : > { %s732_s9 = sshll.u32 %s1446_s26, 4  ;;  %s1217_s16 = smov [#allocation8]   ;;  %s1468_s9 = int_to_ptr.vmem [resolvable:$true] %s732_s9 }
 0x270   : > { %s1466_s14 = scalar_lea.hbm %s1518_s5, %s891_s30  ;;  %s1135_s15 = scalar_lea.vmem %s1468_s9, %s1455_s12 }
 0x271   : > { %p1136_p1 = scmp.ne.s32.totalorder %s1468_s9, %s1135_s15  ;;  %s1139_s29 = sshll.u32 %s1217_s16, 4  ;;  %s1140_s29 = int_to_ptr.vmem [resolvable:$false] %s1139_s29 }
 0x272   : > { %s1141_s22 = scalar_lea.vmem %s1140_s29, 640  ;;  %p1142_p5 = scmp.lt.s32.totalorder %s1468_s9, %s1140_s29 }
 0x273   : > { %p1137_p4 = pnand %p1136_p1, %p879_p10  ;;  %p1143_p6 = scmp.lt.s32.totalorder %s1141_s22, %s1135_s15 }
 0x275   : > { %p1138_p3 = pneg %p1137_p4  ;;  %p1144_p11 = por %p1143_p6, %p1142_p5 }
 0x277   : > { %p1145_p13 = pnand %p1144_p11, %p1138_p3 }
 0x279   : > { %1148 = shalt.err (!%p1145_p13)
}
 0x27a   : > { %s1149_s7 = scalar_lea.hbm %s1466_s14, %s1455_s12  ;;  %s1153_s26 = scalar_lea.hbm %s1518_s5, 2432 }
 0x27b   : > { %p1150_p12 = scmp.ne.s32.totalorder %s1466_s14, %s1149_s7  ;;  %p1154_p7 = scmp.lt.u32.totalorder %s1466_s14, %s1518_s5 }
 0x27c   : > { %p1155_p8 = scmp.lt.u32.totalorder %s1153_s26, %s1149_s7  ;;  %p1157_p1 = scmp.lt.u32.totalorder %s1149_s7, %s1466_s14 }
 0x27d   : > { %p1151_p0 = pnand %p1150_p12, %p879_p10 }
 0x27e   : > { %p1156_p9 = por %p1155_p8, %p1154_p7 }
 0x27f   : > { %p1152_p2 = pneg %p1151_p0 }
 0x280   : > { %p1158_p4 = por %p1157_p1, %p1156_p9 }
 0x282   : > { %p1159_p3 = pnand %p1158_p4, %p1152_p2 }
 0x284   : > { %1162 = shalt.err (!%p1159_p3)
}
 0x285   : > { %s1218_s28 = smov 64   ;;  %s1219_s30 = smov 4  }
 0x286   : > { %738 = dma.vmem_to_hbm [thread:$0]  (%p879_p10), %s1468_s9, %s1455_s12, %s1466_s14, %s713_s8, %s1218_s28, %s1218_s28, %s1219_s30  }
 0x287 PF: > { %p964_p5 = scmp.ge.s32.totalorder %s1205_s21, 2  ;;  %s747_s27 = sand.u32 1, %s1193_s18  }
 0x288   : > { %p1535_p6 = scmp.ne.s32.totalorder %s1526_s6, 0  ;;  %s748_s11 = scalar_lea.sflag [#allocation4], %s747_s27 }
 0x28a   : > { %p957_p11 = pnand %p964_p5, %p1535_p6 }
 0x28c   : > { %1188 = dma.done.wait (!%p957_p11), %s748_s11, 320  }
 0x28d   : > { %1190 = vsyncadd (!%p957_p11), %s748_s11, 4294966976  ;;  %s1536_s15 = sld [smem:[#allocation12_spill]]  ;;  %p19_p13 = scmp.ge.s32.totalorder %s1275_s24, 10  }
 0x28e   : > { %s1537_s18 = smov %s1197_s19  ;;  %s1538_s19 = smov %s1201_s20 }
 0x28f   : > { %s1540_s21 = smov %s1275_s24  ;;  %21 = sbr.rel (!%p19_p13) target bundleno = 6 (0x6), region = 93 }
 0x293   : > { %s1539_s20 = smov %s1536_s15 }
 0x296   :  { %753 = vsyncpa [#allocation3], 1 }
 0x297   :  { %755 = vsyncpa [#allocation3 + $0x1], 1 }
 0x298   :  { %756 = vsyncpa [#allocation6], 1 }
 0x299   :  { %757 = vsyncpa [#allocation4], 1 }
 0x29a   :  { %759 = vsyncpa [#allocation4 + $0x1], 1 }

</bundles_post_ra>
